<compile_context>
chip_gen: v7x
topology: tpu7x:2x2x1
jax: 0.10.0
libtpu: 0.0.40
codegen_flags: <defaults>
</compile_context>

<pallas_src>
import jax
import jax.numpy as jnp
from jax.experimental import pallas as pl
from jax.experimental.pallas import tpu as pltpu


def _assemble_kernel(target_ref, static_ref, dynamic_ref, out_ref):
    # target_ref : (Bt, S, 1)
    # static_ref : (Bt, 1, Fs)
    # dynamic_ref: (Bt, S, Fd)
    # out_ref    : (Bt, S, 1 + Fs + Fd)
    Bt, S, _ = target_ref.shape
    Fs = static_ref.shape[-1]
    Fd = dynamic_ref.shape[-1]

    # target.unsqueeze(-1) -> first output channel
    out_ref[:, :, 0:1] = target_ref[...]
    # einsum('bnm,bmk->bnk', ones, static[:,None,:]) with m==1 == broadcast
    out_ref[:, :, 1:1 + Fs] = jnp.broadcast_to(static_ref[...], (Bt, S, Fs))
    # dynamic features passed through
    out_ref[:, :, 1 + Fs:1 + Fs + Fd] = dynamic_ref[...]


def _pick_batch_tile(B, S, Ftot, itemsize, target_block_bytes=2 * 1024 * 1024):
    """Largest batch tile whose output block stays around ~2 MiB.

    ~1-2 MiB per operand amortizes the ~0.35 us/step grid overhead while a
    double-buffered set of all 4 operands stays far under the scoped-VMEM
    defaults on v5e (16 MiB), v6e (32 MiB) and v7x (32 MiB scoped / 64 MiB
    physical).
    """
    row_bytes = max(1, S * Ftot * itemsize)
    bt = max(1, target_block_bytes // row_bytes)
    return int(min(B, bt))


def assemble_inputs(target, static_features, dynamic_features, *, batch_tile=None):
    B, S = target.shape
    Fs = static_features.shape[-1]
    Fd = dynamic_features.shape[-1]
    Ftot = 1 + Fs + Fd

    out_dtype = jnp.result_type(
        target.dtype, static_features.dtype, dynamic_features.dtype
    )
    itemsize = jnp.dtype(out_dtype).itemsize

    # Free row-major re-views (match unsqueeze(-1) / unsqueeze(1)); they keep
    # the batch axis out of the last two block dims so it can be tiled freely.
    target3 = target.reshape(B, S, 1).astype(out_dtype)
    static3 = static_features.reshape(B, 1, Fs).astype(out_dtype)
    dynamic3 = dynamic_features.astype(out_dtype)

    if batch_tile is None:
        batch_tile = _pick_batch_tile(B, S, Ftot, itemsize)
    Bt = int(batch_tile)
    grid = (pl.cdiv(B, Bt),)

    bytes_accessed = itemsize * (
        B * S * 1 + B * Fs + B * S * Fd + B * S * Ftot
    )

    return pl.pallas_call(
        _assemble_kernel,
        out_shape=jax.ShapeDtypeStruct((B, S, Ftot), out_dtype),
        grid_spec=pltpu.PrefetchScalarGridSpec(
            num_scalar_prefetch=0,
            grid=grid,
            in_specs=[
                pl.BlockSpec((Bt, S, 1), lambda b: (b, 0, 0)),
                pl.BlockSpec((Bt, 1, Fs), lambda b: (b, 0, 0)),
                pl.BlockSpec((Bt, S, Fd), lambda b: (b, 0, 0)),
            ],
            out_specs=pl.BlockSpec((Bt, S, Ftot), lambda b: (b, 0, 0)),
        ),
        compiler_params=pltpu.CompilerParams(
            dimension_semantics=("parallel",),
        ),
        cost_estimate=pl.CostEstimate(
            flops=0, transcendentals=0, bytes_accessed=bytes_accessed
        ),
    )(target3, static3, dynamic3)


def assemble_inputs_ref(target, static_features, dynamic_features):
    """Pure-JAX reference matching the PyTorch semantics exactly."""
    tgt3 = target[:, :, None]
    helper_ones = jnp.ones_like(tgt3)
    tiled_static = jnp.einsum(
        "bnm,bmk->bnk", helper_ones, static_features[:, None, :]
    )
    return jnp.concatenate([tgt3, tiled_static, dynamic_features], axis=2)


if __name__ == "__main__":
    B, S, Fs, Fd = 2, 8, 3, 4

    key = jax.random.PRNGKey(0)
    k1, k2, k3 = jax.random.split(key, 3)
    target = jax.random.normal(k1, (B, S), dtype=jnp.float32)
    static_features = jax.random.normal(k2, (B, Fs), dtype=jnp.float32)
    dynamic_features = jax.random.normal(k3, (B, S, Fd), dtype=jnp.float32)

    out = assemble_inputs(target, static_features, dynamic_features)
    out = jax.block_until_ready(out)

    ref = assemble_inputs_ref(target, static_features, dynamic_features)
    assert out.shape == (B, S, 1 + Fs + Fd), out.shape
    assert jnp.allclose(out, ref, atol=1e-6, rtol=1e-6), "mismatch vs reference"

    print("KERNEL_OK")
</pallas_src>

<mosaic_0001>
module attributes {stable_mosaic.version = 11 : i64} {
  func.func @_assemble_kernel(%arg0: i32, %arg1: memref<2x8x1xf32, #tpu.memory_space<vmem>>, %arg2: memref<2x1x3xf32, #tpu.memory_space<vmem>>, %arg3: memref<2x8x4xf32, #tpu.memory_space<vmem>>, %arg4: memref<2x8x8xf32, #tpu.memory_space<vmem>>) attributes {dimension_semantics = [#tpu.dimension_semantics<parallel>], iteration_bounds = array<i64: 1>, scalar_prefetch = 0 : i64, scratch_operands = 0 : i64, tpu.core_type = #tpu.core_type<tc>, window_params = [{transform_indices = @transform_0, window_bounds = array<i64: 2, 8, 1>}, {transform_indices = @transform_1, window_bounds = array<i64: 2, 1, 3>}, {transform_indices = @transform_2, window_bounds = array<i64: 2, 8, 4>}, {transform_indices = @transform_3, window_bounds = array<i64: 2, 8, 8>}]} {
    %c0 = arith.constant 0 : index
    %c0_0 = arith.constant 0 : index
    %c0_1 = arith.constant 0 : index
    %0 = vector.load %arg1[%c0, %c0_0, %c0_1] : memref<2x8x1xf32, #tpu.memory_space<vmem>>, vector<2x8x1xf32>
    %c0_2 = arith.constant 0 : index
    %c0_3 = arith.constant 0 : index
    %c0_4 = arith.constant 0 : index
    %1 = vector.load %arg4[%c0_2, %c0_3, %c0_4] : memref<2x8x8xf32, #tpu.memory_space<vmem>>, vector<2x8x1xf32>
    tpu.vector_store %arg4[%c0_2, %c0_3, %c0_4], %0 {strides = array<i32>} : memref<2x8x8xf32, #tpu.memory_space<vmem>>, vector<2x8x1xf32>,
    %c0_5 = arith.constant 0 : index
    %c0_6 = arith.constant 0 : index
    %c0_7 = arith.constant 0 : index
    %2 = vector.load %arg2[%c0_5, %c0_6, %c0_7] : memref<2x1x3xf32, #tpu.memory_space<vmem>>, vector<2x1x3xf32>
    %3 = vector.shape_cast %2 : vector<2x1x3xf32> to vector<2x1x3xf32>
    %4 = vector.broadcast %3 : vector<2x1x3xf32> to vector<2x8x3xf32>
    %c0_8 = arith.constant 0 : index
    %c0_9 = arith.constant 0 : index
    %c1 = arith.constant 1 : index
    %5 = vector.load %arg4[%c0_8, %c0_9, %c1] : memref<2x8x8xf32, #tpu.memory_space<vmem>>, vector<2x8x3xf32>
    tpu.vector_store %arg4[%c0_8, %c0_9, %c1], %4 {strides = array<i32>} : memref<2x8x8xf32, #tpu.memory_space<vmem>>, vector<2x8x3xf32>,
    %c0_10 = arith.constant 0 : index
    %c0_11 = arith.constant 0 : index
    %c0_12 = arith.constant 0 : index
    %6 = vector.load %arg3[%c0_10, %c0_11, %c0_12] : memref<2x8x4xf32, #tpu.memory_space<vmem>>, vector<2x8x4xf32>
    %c0_13 = arith.constant 0 : index
    %c0_14 = arith.constant 0 : index
    %c4 = arith.constant 4 : index
    %7 = vector.load %arg4[%c0_13, %c0_14, %c4] : memref<2x8x8xf32, #tpu.memory_space<vmem>>, vector<2x8x4xf32>
    tpu.vector_store %arg4[%c0_13, %c0_14, %c4], %6 {strides = array<i32>} : memref<2x8x8xf32, #tpu.memory_space<vmem>>, vector<2x8x4xf32>,
    return
  }
  func.func @transform_0(%arg0: i32) -> (i32, i32, i32) {
    %c0_i32 = arith.constant 0 : i32
    %c0_i32_0 = arith.constant 0 : i32
    %c0_i32_1 = arith.constant 0 : i32
    return %arg0, %c0_i32, %c0_i32_0 : i32, i32, i32
  }
  func.func @transform_1(%arg0: i32) -> (i32, i32, i32) {
    %c0_i32 = arith.constant 0 : i32
    %c0_i32_0 = arith.constant 0 : i32
    %c0_i32_1 = arith.constant 0 : i32
    return %arg0, %c0_i32, %c0_i32_0 : i32, i32, i32
  }
  func.func @transform_2(%arg0: i32) -> (i32, i32, i32) {
    %c0_i32 = arith.constant 0 : i32
    %c0_i32_0 = arith.constant 0 : i32
    %c0_i32_1 = arith.constant 0 : i32
    return %arg0, %c0_i32, %c0_i32_0 : i32, i32, i32
  }
  func.func @transform_3(%arg0: i32) -> (i32, i32, i32) {
    %c0_i32 = arith.constant 0 : i32
    %c0_i32_0 = arith.constant 0 : i32
    %c0_i32_1 = arith.constant 0 : i32
    return %arg0, %c0_i32, %c0_i32_0 : i32, i32, i32
  }
}

</mosaic_0001>

<bundles_post_ra>
// kernel: tpu_custom_call.1
= control target key start
LH: loop header
LB: loop body
LE: loop exit
PB: predicated region body
PF: predicated region fallthrough
CT: control target
= control target key end

     0   :  { %s101_s16 = smov 1   ;;  %s102_s17 = smov 4   ;;  %vm17_vm0 = vcmask 7168   ;;  %s156_s0 = inlined_call_operand.vmem [shape: f32[2,8,1], index: 0, kind: input, shape index: {}]   ;;  %s157_s1 = inlined_call_operand.vmem [shape: f32[2,1,3], index: 1, kind: input, shape index: {}]   ;;  %s158_s2 = inlined_call_operand.vmem [shape: f32[2,8,4], index: 2, kind: input, shape index: {}]   ;;  %s159_s3 = inlined_call_operand.hbm [shape: f32[2,8,8], index: 3, kind: output, shape index: {}]  }
   0x1   :  { %v70_v0 = vld [vmem:[%s157_s1] ss:$0 sm:$0xff]  ;;  %v42_v2 = vld [vmem:[%s158_s2 + $0x8] sm:$0xff]  ;;  %v71_v4 = vld [vmem:[%s157_s1 + $0x1] ss:$0 sm:$0xff] }
   0x2   :  { %v41_v1 = vld [vmem:[%s158_s2] sm:$0xff]  ;;  %32 = vrot.lane.b32.xlu0 %v70_v0, %s101_s16  ;;  %v16_v5 = vld [vmem:[%s156_s0 + $0x8] sm:$0xff] }
   0x3   :  { %45 = vrot.lane.b32.xlu1 %v41_v1, %s102_s17  ;;  %v15_v3 = vld [vmem:[%s156_s0] sm:$0xff] }
   0x4   :  { %18 = vst.msk [vmem:[#allocation2] sm:$0xff] %vm17_vm0, %v15_v3 }
   0x5   :  { %8 = vsyncpa [#allocation3], 0  ;;  %19 = vst.msk [vmem:[#allocation2 + $0x8] sm:$0xff] %vm17_vm0, %v16_v5  ;;  %vm38_vm1 = vcmask 31752   ;;  %vm51_vm2 = vcmask 64544   ;;  %s103_s2 = smov [#allocation2]  }
   0x6   :  { %34 = vrot.lane.b32.xlu0 %v71_v4, %s101_s16  ;;  %s59_s26 = sshll.u32 %s103_s2, 4  ;;  %s60_s26 = int_to_ptr.vmem [resolvable:$true] %s59_s26 }
   0x7   :  { %47 = vrot.lane.b32.xlu1 %v42_v2, %s102_s17  ;;  %s77_s1 = scalar_lea.vmem %s60_s26, 256  ;;  %p82_p1 = scmp.lt.s32.totalorder %s60_s26, %s60_s26 }
   0x8   :  { %p78_p0 = scmp.ne.s32.totalorder %s60_s26, %s77_s1  ;;  %p83_p2 = scmp.lt.s32.totalorder %s77_s1, %s77_s1 }
   0xa   :  { %p84_p3 = por %p83_p2, %p82_p1 }
   0xc   :  { %p85_p4 = pnand %p84_p3, %p78_p0 }
  0x74   :  { %v33_v6 = vpop.permute.xlu0 %32 }
  0x75   :  { %v46_v7 = vpop.permute.xlu1 %45  ;;  %39 = vst.msk [vmem:[#allocation2] sm:$0xff] %vm38_vm1, %v33_v6 }
  0x76   :  { %52 = vst.msk [vmem:[#allocation2] sm:$0xff] %vm51_vm2, %v46_v7 }
  0x78   :  { %v35_v8 = vpop.permute.xlu0 %34 }
  0x79   :  { %v48_v9 = vpop.permute.xlu1 %47  ;;  %40 = vst.msk [vmem:[#allocation2 + $0x8] sm:$0xff] %vm38_vm1, %v35_v8 }
  0x7a   :  { %53 = vst.msk [vmem:[#allocation2 + $0x8] sm:$0xff] %vm51_vm2, %v48_v9 }
  0x7b   :  { %88 = shalt.err (!%p85_p4)
}
  0x7c   :  { %s89_s28 = scalar_lea.hbm %s159_s3, 256 }
  0x7d   :  { %p90_p5 = scmp.ne.s32.totalorder %s159_s3, %s89_s28  ;;  %p93_p6 = scmp.lt.u32.totalorder %s89_s28, %s159_s3 }
  0x7f   :  { %p95_p7 = pnand %p93_p6, %p90_p5 }
  0x81   :  { %98 = shalt.err (!%p95_p7)
}
  0x82   :  { %s104_s6 = smov 128   ;;  %s105_s7 = smov 8  }
  0x83   :  { %65 = dma.vmem_to_hbm [thread:$0]  %s60_s26, 256, %s159_s3, [#allocation3], %s104_s6, %s104_s6, %s105_s7  }
  0x84   :  { %99 = dma.done.wait [#allocation3], 256  }
  0x85   :  { %100 = vsyncadd [#allocation3], 4294967040 }
  0x86   :  { %69 = vsyncpa [#allocation3], 1 }

</bundles_post_ra>
